<compile_context>
chip_gen: v6e
topology: v6e:2x2x1
jax: 0.10.0
libtpu: 0.0.40
codegen_flags: <defaults>
</compile_context>

<pallas_src>
import functools

import jax
import jax.numpy as jnp
from jax.experimental import pallas as pl
from jax.experimental.pallas import tpu as pltpu


def _round_up(n: int, m: int) -> int:
    return ((n + m - 1) // m) * m


def _mlp_kernel(x_ref, w12_ref, b12_ref, w3_ref, b3_ref, o_ref):
    # Fused (layer1 @ layer2): h = x @ W12 + b12   (all f32, MXU accumulate f32)
    h = jnp.dot(x_ref[...], w12_ref[...], preferred_element_type=jnp.float32)
    h = h + b12_ref[...]
    # act2 = ReLU
    h = jnp.maximum(h, 0.0)
    # output layer, narrow N = out_dim: y = h @ W3 + b3
    y = jnp.dot(h, w3_ref[...], preferred_element_type=jnp.float32)
    y = y + b3_ref[...]
    # act0 = Sigmoid, written as the exact tanh identity: 1 EUP op instead of
    # exp + reciprocal (EUP is the tightest unit once output bytes are minimal).
    o_ref[...] = (0.5 * (jnp.tanh(0.5 * y) + 1.0)).astype(o_ref.dtype)


def prepare_params(w1, b1, w2, b2, w3, b3):
    """One-time prep: fuse layer1+layer2, lane-pad hidden dim to 128 (exact).

    All params stay f32 (kernel is HBM-bound; f32 keeps precision and avoids
    in-kernel casts).  The output dim is NOT padded — the kernel stores a
    narrow (tm, out_dim) block so HBM writeback stays minimal.
    """
    d_in, hidden = w1.shape
    out_dim = w3.shape[1]
    h_pad = _round_up(hidden, 128)

    # Algebraic fusion (no activation between layer1 and layer2).
    w12 = w1 @ w2                       # [d_in, hidden]
    b12 = b1 @ w2 + b2                  # [1, hidden]

    w12_p = jnp.zeros((d_in, h_pad), jnp.float32).at[:, :hidden].set(w12)
    b12_p = jnp.zeros((1, h_pad), jnp.float32).at[:, :hidden].set(b12)
    # Padded hidden rows of W3 multiply exactly-zero hidden activations
    # (ReLU(0) = 0), so zero-padding is exact.
    w3_p = jnp.zeros((h_pad, out_dim), jnp.float32).at[:hidden, :].set(w3)
    b3_p = b3.astype(jnp.float32)       # [1, out_dim]
    return w12_p, b12_p, w3_p, b3_p


@functools.partial(jax.jit, static_argnames=("min_pallas_batch", "block_batch"))
def network_forward(x, w12, b12, w3, b3, *, min_pallas_batch=1024,
                    block_batch=None):
    B, d_in = x.shape
    h_pad = w12.shape[1]
    out_dim = w3.shape[1]

    # ---- small-batch fast path: a single XLA fusion beats pallas fixed cost.
    if B < min_pallas_batch:
        h = jnp.maximum(x @ w12 + b12, 0.0)
        return jax.nn.sigmoid(h @ w3 + b3)

    # ---- batch tile selection ------------------------------------------------
    cap = 2048 if block_batch is None else int(block_batch)
    if B <= cap:
        # One or two tiles; split in two when large enough so both TensorCores
        # on a megacore part (v7x) get a grid step.
        tm = _round_up(pl.cdiv(B, 2), 16) if B > 1024 else B
        tm = min(tm, B)
    else:
        tm = cap
    if tm < B and tm % 8 != 0:          # (8,128) rule: tiled dim must be %8
        tm = max(8, (tm // 8) * 8)
    grid = (pl.cdiv(B, tm),)            # ragged last block is fine (row-indep.)

    # ---- VMEM budget: computed requirement + headroom, no artificial floor.
    lane = lambda n: _round_up(n, 128)
    weight_bytes = (d_in * lane(h_pad) + lane(h_pad)
                    + h_pad * lane(out_dim) + lane(out_dim)) * 4
    tile_bytes = (tm * lane(d_in) + tm * lane(out_dim)) * 4
    vmem_limit = int(min(2 * tile_bytes + weight_bytes + (4 << 20), 32 << 20))

    flops = 2 * B * (d_in * h_pad + h_pad * out_dim)
    bytes_accessed = int(B * d_in * 4 + B * out_dim * 4 + weight_bytes)

    out = pl.pallas_call(
        _mlp_kernel,
        out_shape=jax.ShapeDtypeStruct((B, out_dim), jnp.float32),
        grid=grid,
        in_specs=[
            pl.BlockSpec((tm, d_in), lambda i: (i, 0)),      # x: tiled batch
            pl.BlockSpec((d_in, h_pad), lambda i: (0, 0)),   # W12: VMEM-resident
            pl.BlockSpec((1, h_pad), lambda i: (0, 0)),      # b12
            pl.BlockSpec((h_pad, out_dim), lambda i: (0, 0)),  # W3
            pl.BlockSpec((1, out_dim), lambda i: (0, 0)),    # b3
        ],
        out_specs=pl.BlockSpec((tm, out_dim), lambda i: (i, 0)),  # narrow store
        compiler_params=pltpu.CompilerParams(
            dimension_semantics=("parallel",),
            vmem_limit_bytes=vmem_limit,
        ),
        cost_estimate=pl.CostEstimate(
            flops=flops,
            transcendentals=B * out_dim,
            bytes_accessed=bytes_accessed,
        ),
    )(x, w12, b12, w3, b3)
    return out


def init_params(key, input_dim, output_dim):
    """Deterministic init mimicking PyTorch nn.Linear default U[-1/sqrt(fan_in), ...]."""
    hidden = (input_dim + output_dim) * 2
    keys = jax.random.split(key, 6)

    def linear_init(kw, kb, fan_in, fan_out):
        bound = 1.0 / jnp.sqrt(fan_in)
        w = jax.random.uniform(kw, (fan_in, fan_out), jnp.float32, -bound, bound)
        b = jax.random.uniform(kb, (1, fan_out), jnp.float32, -bound, bound)
        return w, b

    w1, b1 = linear_init(keys[0], keys[1], input_dim, hidden)
    w2, b2 = linear_init(keys[2], keys[3], hidden, hidden)
    w3, b3 = linear_init(keys[4], keys[5], hidden, output_dim)
    return (w1, b1, w2, b2, w3, b3)


if __name__ == "__main__":
    input_dim = 16
    output_dim = 8

    key = jax.random.PRNGKey(0)
    key_x, key_xs, key_p = jax.random.split(key, 3)

    raw_params = init_params(key_p, input_dim, output_dim)
    fused_params = prepare_params(*raw_params)

    # Pure-JAX f32 reference of the original (unfused) module forward.
    w1, b1, w2, b2, w3, b3 = raw_params

    def ref_forward(xx):
        return jax.nn.sigmoid(
            jnp.maximum((xx @ w1 + b1) @ w2 + b2, 0.0) @ w3 + b3)

    # (1) Pallas-kernel path, batch NOT a multiple of the tile -> exercises the
    #     ragged last grid block and the narrow output store.
    B = 400
    x = jax.random.normal(key_x, (B, input_dim), jnp.float32)
    out = network_forward(x, *fused_params, min_pallas_batch=0, block_batch=128)
    out = jax.block_until_ready(out)
    assert out.shape == (B, output_dim)
    ref = ref_forward(x)
    assert jnp.allclose(out, ref, atol=1e-2, rtol=1e-2), float(
        jnp.max(jnp.abs(out - ref)))

    # (2) Pallas-kernel path with automatic tile selection (single block).
    out2 = network_forward(x, *fused_params, min_pallas_batch=0)
    out2 = jax.block_until_ready(out2)
    assert jnp.allclose(out2, ref, atol=1e-2, rtol=1e-2)

    # (3) Small-batch fast path (pure XLA fusion, default dispatch).
    x_small = jax.random.normal(key_xs, (8, input_dim), jnp.float32)
    out_small = jax.block_until_ready(network_forward(x_small, *fused_params))
    assert out_small.shape == (8, output_dim)
    assert jnp.allclose(out_small, ref_forward(x_small), atol=1e-2, rtol=1e-2)

    print("KERNEL_OK")
</pallas_src>

<mosaic_0001>
module attributes {stable_mosaic.version = 11 : i64} {
  func.func @_mlp_kernel(%arg0: i32, %arg1: memref<128x16xf32, #tpu.memory_space<vmem>>, %arg2: memref<16x128xf32, #tpu.memory_space<vmem>>, %arg3: memref<1x128xf32, #tpu.memory_space<vmem>>, %arg4: memref<128x8xf32, #tpu.memory_space<vmem>>, %arg5: memref<1x8xf32, #tpu.memory_space<vmem>>, %arg6: memref<128x8xf32, #tpu.memory_space<vmem>>) attributes {dimension_semantics = [#tpu.dimension_semantics<parallel>], iteration_bounds = array<i64: 4>, scalar_prefetch = 0 : i64, scratch_operands = 0 : i64, tpu.core_type = #tpu.core_type<tc>, window_params = [{transform_indices = @transform_0, window_bounds = array<i64: 128, 16>}, {pipeline_mode = #tpu.pipeline_mode<synchronous>, transform_indices = @transform_1, window_bounds = array<i64: 16, 128>}, {pipeline_mode = #tpu.pipeline_mode<synchronous>, transform_indices = @transform_2, window_bounds = array<i64: 1, 128>}, {pipeline_mode = #tpu.pipeline_mode<synchronous>, transform_indices = @transform_3, window_bounds = array<i64: 128, 8>}, {pipeline_mode = #tpu.pipeline_mode<synchronous>, transform_indices = @transform_4, window_bounds = array<i64: 1, 8>}, {transform_indices = @transform_5, window_bounds = array<i64: 128, 8>}]} {
    %c0 = arith.constant 0 : index
    %c0_0 = arith.constant 0 : index
    %0 = vector.load %arg1[%c0, %c0_0] : memref<128x16xf32, #tpu.memory_space<vmem>>, vector<128x16xf32>
    %c0_1 = arith.constant 0 : index
    %c0_2 = arith.constant 0 : index
    %1 = vector.load %arg2[%c0_1, %c0_2] : memref<16x128xf32, #tpu.memory_space<vmem>>, vector<16x128xf32>
    %cst = arith.constant dense<0.000000e+00> : vector<128x128xf32>
    %2 = tpu.matmul %0, %1, %cst {dimension_numbers = #tpu.dot_dimension_numbers<[1], [0], [0], [1], [0, 0, 1, 1], [], []>} : vector<128x16xf32>, vector<16x128xf32>, vector<128x128xf32> -> vector<128x128xf32>
    %c0_3 = arith.constant 0 : index
    %c0_4 = arith.constant 0 : index
    %3 = vector.load %arg3[%c0_3, %c0_4] : memref<1x128xf32, #tpu.memory_space<vmem>>, vector<1x128xf32>
    %4 = vector.broadcast %3 : vector<1x128xf32> to vector<128x128xf32>
    %5 = arith.addf %2, %4 : vector<128x128xf32>
    %cst_5 = arith.constant 0.000000e+00 : f32
    %6 = vector.broadcast %cst_5 : f32 to vector<128x128xf32>
    %7 = arith.maximumf %5, %6 : vector<128x128xf32>
    %c0_6 = arith.constant 0 : index
    %c0_7 = arith.constant 0 : index
    %8 = vector.load %arg4[%c0_6, %c0_7] : memref<128x8xf32, #tpu.memory_space<vmem>>, vector<128x8xf32>
    %cst_8 = arith.constant dense<0.000000e+00> : vector<128x8xf32>
    %9 = tpu.matmul %7, %8, %cst_8 {dimension_numbers = #tpu.dot_dimension_numbers<[1], [0], [0], [1], [0, 0, 1, 1], [], []>} : vector<128x128xf32>, vector<128x8xf32>, vector<128x8xf32> -> vector<128x8xf32>
    %c0_9 = arith.constant 0 : index
    %c0_10 = arith.constant 0 : index
    %10 = vector.load %arg5[%c0_9, %c0_10] : memref<1x8xf32, #tpu.memory_space<vmem>>, vector<1x8xf32>
    %11 = vector.broadcast %10 : vector<1x8xf32> to vector<128x8xf32>
    %12 = arith.addf %9, %11 : vector<128x8xf32>
    %cst_11 = arith.constant 5.000000e-01 : f32
    %13 = vector.broadcast %cst_11 : f32 to vector<128x8xf32>
    %14 = arith.mulf %13, %12 : vector<128x8xf32>
    %15 = math.tanh %14 : vector<128x8xf32>
    %cst_12 = arith.constant 1.000000e+00 : f32
    %16 = vector.broadcast %cst_12 : f32 to vector<128x8xf32>
    %17 = arith.addf %15, %16 : vector<128x8xf32>
    %cst_13 = arith.constant 5.000000e-01 : f32
    %18 = vector.broadcast %cst_13 : f32 to vector<128x8xf32>
    %19 = arith.mulf %18, %17 : vector<128x8xf32>
    %c0_14 = arith.constant 0 : index
    %c0_15 = arith.constant 0 : index
    %20 = vector.load %arg6[%c0_14, %c0_15] : memref<128x8xf32, #tpu.memory_space<vmem>>, vector<128x8xf32>
    tpu.vector_store %arg6[%c0_14, %c0_15], %19 {strides = array<i32>} : memref<128x8xf32, #tpu.memory_space<vmem>>, vector<128x8xf32>,
    return
  }
  func.func @transform_0(%arg0: i32) -> (i32, i32) {
    %c0_i32 = arith.constant 0 : i32
    %c0_i32_0 = arith.constant 0 : i32
    return %arg0, %c0_i32 : i32, i32
  }
  func.func @transform_1(%arg0: i32) -> (i32, i32) {
    %c0_i32 = arith.constant 0 : i32
    %c0_i32_0 = arith.constant 0 : i32
    %c0_i32_1 = arith.constant 0 : i32
    return %c0_i32, %c0_i32_0 : i32, i32
  }
  func.func @transform_2(%arg0: i32) -> (i32, i32) {
    %c0_i32 = arith.constant 0 : i32
    %c0_i32_0 = arith.constant 0 : i32
    %c0_i32_1 = arith.constant 0 : i32
    return %c0_i32, %c0_i32_0 : i32, i32
  }
  func.func @transform_3(%arg0: i32) -> (i32, i32) {
    %c0_i32 = arith.constant 0 : i32
    %c0_i32_0 = arith.constant 0 : i32
    %c0_i32_1 = arith.constant 0 : i32
    return %c0_i32, %c0_i32_0 : i32, i32
  }
  func.func @transform_4(%arg0: i32) -> (i32, i32) {
    %c0_i32 = arith.constant 0 : i32
    %c0_i32_0 = arith.constant 0 : i32
    %c0_i32_1 = arith.constant 0 : i32
    return %c0_i32, %c0_i32_0 : i32, i32
  }
  func.func @transform_5(%arg0: i32) -> (i32, i32) {
    %c0_i32 = arith.constant 0 : i32
    %c0_i32_0 = arith.constant 0 : i32
    return %arg0, %c0_i32 : i32, i32
  }
}

</mosaic_0001>

<bundles_post_ra>
// kernel: network_forward.1
= control target key start
LH: loop header
LB: loop body
LE: loop exit
PB: predicated region body
PF: predicated region fallthrough
CT: control target
= control target key end

     0   :  { %s1455_s18 = smov 0   ;;  %s1457_s19 = smov 0   ;;  %s1739_s0 = inlined_call_operand.vmem [shape: f32[400,16], index: 0, kind: input, shape index: {}]   ;;  %s1740_s1 = inlined_call_operand.vmem [shape: f32[16,128], index: 1, kind: input, shape index: {}]   ;;  %s1741_s2 = inlined_call_operand.vmem [shape: f32[1,128], index: 2, kind: input, shape index: {}]   ;;  %s1742_s3 = inlined_call_operand.vmem [shape: f32[128,8], index: 3, kind: input, shape index: {}]   ;;  %s1743_s4 = inlined_call_operand.vmem [shape: f32[1,8], index: 4, kind: input, shape index: {}]   ;;  %s1744_s5 = inlined_call_operand.vmem [shape: f32[400,8], index: 5, kind: output, shape index: {}]  }
   0x1   :  { %s1459_s20 = smov 0  }
   0x2 LB: > { %s1468_s21 = sadd.s32 4294967295, %s1391_s20   ;;  %s1470_s22 = sadd.s32 1, %s1391_s20   ;;  %s1391_s20 = sphi %s1459_s20, %s1751_s20   ;;  %s1387_s19 = sphi %s1457_s19, %s1750_s19   ;;  %s1383_s18 = sphi %s1455_s18, %s1749_s18  }
   0x3   : > { %s129_s23 = ssub.s32 %s1391_s20, %s1470_s22  ;;  %s132_s24 = sadd.s32 1, %s1387_s19 }
   0x4   : > { %p130_p0 = scmp.eq.s32.totalorder %s129_s23, 0  ;;  %p142_p1 = scmp.ne.s32.totalorder %s1387_s19, %s1383_s18 }
   0x5   : > { %p143_p2 = scmp.eq.s32.totalorder %s1468_s21, 3  ;;  %p1009_p3 = scmp.ge.s32.totalorder %s1391_s20, 1 }
   0x6   : > { %s1478_s25 = scalar_select %p130_p0, %s1387_s19, %s132_s24  }
   0x7   : > { %p1480_p4 = por %p143_p2, %p142_p1  ;;  %p196_p5 = scmp.lt.s32.totalorder %s1391_s20, 5 }
   0x9   : > { %p197_p6 = pnand %p1009_p3, %p196_p5 }
   0xa   : > { %s1491_s6 = sshll.u32 (!%p197_p6), %s1468_s21, 4  ;;  %s224_s12 = sand.u32 (!%p197_p6), 1, %s1383_s18  }
   0xb   : > { %200 = sbr.rel (%p197_p6) target bundleno = 511 (0x1ff), region = 40  ;;  %p232_p7 = scmp.lt.s32.totalorder (!%p197_p6), %s1491_s6, 49 }
   0xc   : > { %s1010_s13 = sshll.u32 (!%p197_p6), %s224_s12, 7 }
   0xd   : > { %s1600_s18 = scalar_lea.vmem (!%p197_p6), [#allocation2], %s1010_s13  }
  0x10   : > { %v263_v0 = vld [vmem:[%s1740_s1 + $0x8] sm:$0xff]  ;;  %v262_v1 = vld [vmem:[%s1740_s1] sm:$0xff]  ;;  %v496_v2 = vld [vmem:[%s1742_s3 + $0x78] sm:$0xff]  ;;  %s233_s11 = scalar_select %p232_p7, %s1491_s6, 49  ;;  %vm271_vm0 = vcmask 130048   ;;  %vm713_vm1 = vcmask 64512  }
  0x11   : > { %1101 = vmatprep.subr.mxu0 %v263_v0  ;;  %1185 = vmatprep.subr.mxu1 %v496_v2  ;;  %v495_v3 = vld [vmem:[%s1742_s3 + $0x70] sm:$0xff]  ;;  %v494_v4 = vld [vmem:[%s1742_s3 + $0x68] sm:$0xff]  ;;  %v493_v5 = vld [vmem:[%s1742_s3 + $0x60] sm:$0xff]  ;;  %s1048_s15 = sshll.u32 (%p1480_p4), %s1468_s21, 7 }
  0x12   : > { %1102 = vmatpush3.msra.mxu0 %v263_v0  ;;  %1201 = vmatpush3.msra.mxu1 %v496_v2  ;;  %s1012_s14 = sshll.u32 %s233_s11, 3  ;;  %v492_v9 = vld [vmem:[%s1742_s3 + $0x58] sm:$0xff]  ;;  %v491_v12 = vld [vmem:[%s1742_s3 + $0x50] sm:$0xff]  ;;  %v490_v15 = vld [vmem:[%s1742_s3 + $0x48] sm:$0xff]  ;;  %s1646_s23 = scalar_lea.vmem (%p1480_p4), %s1744_s5, %s1048_s15  }
  0x13   : > { %1103 = vmatprep.subr.mxu0 %v262_v1  ;;  %1186 = vmatprep.subr.mxu1 %v495_v3  ;;  %s1507_s17 = scalar_lea.vmem %s1739_s0, %s1012_s14  ;;  %v489_v18 = vld [vmem:[%s1742_s3 + $0x40] sm:$0xff]  ;;  %v488_v20 = vld [vmem:[%s1742_s3 + $0x38] sm:$0xff]  ;;  %v487_v22 = vld [vmem:[%s1742_s3 + $0x30] sm:$0xff]  ;;  %s738_s14 = ssub.s32 (%p1480_p4), 50, %s1491_s6 }
  0x14   : > { %1104 = vmatpush3.msra.mxu0 %v262_v1  ;;  %1202 = vmatpush3.msra.mxu1 %v495_v3  ;;  %v246_v6 = vld [vmem:[%s1507_s17] sm:$0xff]  ;;  %v247_v7 = vld [vmem:[%s1507_s17 + $0x8] sm:$0xff]  ;;  %v248_v8 = vld [vmem:[%s1507_s17 + $0x10] sm:$0xff]  ;;  %p739_p8 = scmp.lt.s32.totalorder (%p1480_p4), %s738_s14, 16 }
  0x15   : > { %1129 = vmatprep.subr.mxu0 %v496_v2  ;;  %1187 = vmatprep.subr.mxu1 %v494_v4  ;;  %v249_v10 = vld [vmem:[%s1507_s17 + $0x18] sm:$0xff]  ;;  %v250_v11 = vld [vmem:[%s1507_s17 + $0x20] sm:$0xff]  ;;  %v251_v13 = vld [vmem:[%s1507_s17 + $0x28] sm:$0xff] }
  0x16   : > { %1203 = vmatpush3.msra.mxu1 %v494_v4  ;;  %1105 = vmatprep.mubr.msk.f32.mxu0 %vm271_vm0, %v246_v6  ;;  %v252_v14 = vld [vmem:[%s1507_s17 + $0x30] sm:$0xff]  ;;  %v253_v16 = vld [vmem:[%s1507_s17 + $0x38] sm:$0xff]  ;;  %v254_v17 = vld [vmem:[%s1507_s17 + $0x40] sm:$0xff] }
  0x17   : > { %1188 = vmatprep.subr.mxu1 %v493_v5  ;;  %1106 = vmatmul.mubr.msk.f32.vlgmr.msra.gmra.mxu0 %vm271_vm0, %v247_v7  ;;  %v255_v19 = vld [vmem:[%s1507_s17 + $0x48] sm:$0xff]  ;;  %v256_v21 = vld [vmem:[%s1507_s17 + $0x50] sm:$0xff]  ;;  %v257_v23 = vld [vmem:[%s1507_s17 + $0x58] sm:$0xff] }
  0x18   : > { %1204 = vmatpush3.msra.mxu1 %v493_v5  ;;  %1108 = vmatprep.mubr.msk.f32.mxu0 %vm271_vm0, %v248_v8  ;;  %v486_v24 = vld [vmem:[%s1742_s3 + $0x28] sm:$0xff]  ;;  %v258_v25 = vld [vmem:[%s1507_s17 + $0x60] sm:$0xff]  ;;  %v260_v28 = vld [vmem:[%s1507_s17 + $0x70] sm:$0xff] }
  0x19   : > { %1189 = vmatprep.subr.mxu1 %v492_v9  ;;  %1130 = vmatpush3.msra.mxu0 %v496_v2  ;;  %v485_v26 = vld [vmem:[%s1742_s3 + $0x20] sm:$0xff]  ;;  %v259_v27 = vld [vmem:[%s1507_s17 + $0x68] sm:$0xff]  ;;  %v261_v29 = vld [vmem:[%s1507_s17 + $0x78] sm:$0xff] }
  0x1a   : > { %1131 = vmatprep.subr.mxu0 %v495_v3  ;;  %1205 = vmatpush3.msra.mxu1 %v492_v9  ;;  %v484_v30 = vld [vmem:[%s1742_s3 + $0x18] sm:$0xff]  ;;  %v483_v31 = vld [vmem:[%s1742_s3 + $0x10] sm:$0xff]  ;;  %v482_v32 = vld [vmem:[%s1742_s3 + $0x8] sm:$0xff] }
  0x1b   : > { %1132 = vmatpush3.msra.mxu0 %v495_v3  ;;  %1190 = vmatprep.subr.mxu1 %v491_v12  ;;  %v481_v33 = vld [vmem:[%s1742_s3] sm:$0xff] }
  0x1c   : > { %1109 = vmatmul.mubr.msk.f32.gmra.mxu0 %vm271_vm0, %v249_v10  ;;  %1133 = vmatprep.subr.mxu0 %v494_v4  ;;  %v1013_v34 = vld [vmem:[%s1741_s2] ss:$0 sm:$0xff] }
  0x1d   : > { %1111 = vmatprep.mubr.msk.f32.mxu0 %vm271_vm0, %v250_v11  ;;  %1134 = vmatpush3.msra.mxu0 %v494_v4 }
  0x1e   : > { %1135 = vmatprep.subr.mxu0 %v493_v5  ;;  %1206 = vmatpush3.msra.mxu1 %v491_v12 }
  0x1f   : > { %1136 = vmatpush3.msra.mxu0 %v493_v5  ;;  %1191 = vmatprep.subr.mxu1 %v490_v15 }
  0x20   : > { %1112 = vmatmul.mubr.msk.f32.gmra.mxu0 %vm271_vm0, %v251_v13  ;;  %1137 = vmatprep.subr.mxu0 %v492_v9 }
  0x21   : > { %1114 = vmatprep.mubr.msk.f32.mxu0 %vm271_vm0, %v252_v14  ;;  %1138 = vmatpush3.msra.mxu0 %v492_v9 }
  0x22   : > { %1139 = vmatprep.subr.mxu0 %v491_v12  ;;  %1207 = vmatpush3.msra.mxu1 %v490_v15 }
  0x23   : > { %1140 = vmatpush3.msra.mxu0 %v491_v12  ;;  %1192 = vmatprep.subr.mxu1 %v489_v18 }
  0x24   : > { %1115 = vmatmul.mubr.msk.f32.gmra.mxu0 %vm271_vm0, %v253_v16  ;;  %1141 = vmatprep.subr.mxu0 %v490_v15 }
  0x25   : > { %1117 = vmatprep.mubr.msk.f32.mxu0 %vm271_vm0, %v254_v17  ;;  %1142 = vmatpush3.msra.mxu0 %v490_v15 }
  0x26   : > { %1143 = vmatprep.subr.mxu0 %v489_v18  ;;  %1208 = vmatpush3.msra.mxu1 %v489_v18 }
  0x27   : > { %1144 = vmatpush3.msra.mxu0 %v489_v18  ;;  %1193 = vmatprep.subr.mxu1 %v488_v20 }
  0x28   : > { %1118 = vmatmul.mubr.msk.f32.gmra.mxu0 %vm271_vm0, %v255_v19  ;;  %1145 = vmatprep.subr.mxu0 %v488_v20  ;;  %v1586_v19 = vld [vmem:[%s1743_s4] ss:$0 sm:$0xff] }
  0x29   : > { %1120 = vmatprep.mubr.msk.f32.mxu0 %vm271_vm0, %v256_v21  ;;  %1146 = vmatpush3.msra.mxu0 %v488_v20 }
  0x2a   : > { %1147 = vmatprep.subr.mxu0 %v487_v22  ;;  %1209 = vmatpush3.msra.mxu1 %v488_v20 }
  0x2b   : > { %1148 = vmatpush3.msra.mxu0 %v487_v22  ;;  %1194 = vmatprep.subr.mxu1 %v487_v22 }
  0x2c   : > { %1121 = vmatmul.mubr.msk.f32.gmra.mxu0 %vm271_vm0, %v257_v23  ;;  %1149 = vmatprep.subr.mxu0 %v486_v24 }
  0x2d   : > { %1123 = vmatprep.mubr.msk.f32.mxu0 %vm271_vm0, %v258_v25  ;;  %1150 = vmatpush3.msra.mxu0 %v486_v24 }
  0x2e   : > { %1151 = vmatprep.subr.mxu0 %v485_v26  ;;  %1210 = vmatpush3.msra.mxu1 %v487_v22 }
  0x2f   : > { %1152 = vmatpush3.msra.mxu0 %v485_v26  ;;  %1195 = vmatprep.subr.mxu1 %v486_v24 }
  0x30   : > { %1124 = vmatmul.mubr.msk.f32.gmra.mxu0 %vm271_vm0, %v259_v27  ;;  %1211 = vmatpush3.msra.mxu1 %v486_v24 }
  0x31   : > { %1126 = vmatprep.mubr.msk.f32.mxu0 %vm271_vm0, %v260_v28  ;;  %1196 = vmatprep.subr.mxu1 %v485_v26 }
  0x32   : > { %1212 = vmatpush3.msra.mxu1 %v485_v26  ;;  %1153 = vmatprep.subr.mxu0 %v484_v30 }
  0x33   : > { %1197 = vmatprep.subr.mxu1 %v484_v30  ;;  %1154 = vmatpush3.msra.mxu0 %v484_v30 }
  0x34   : > { %1127 = vmatmul.mubr.msk.f32.gmra.mxu0 %vm271_vm0, %v261_v29  ;;  %1213 = vmatpush3.msra.mxu1 %v484_v30 }
  0x35   : > { %1155 = vmatprep.subr.mxu0 %v483_v31  ;;  %1198 = vmatprep.subr.mxu1 %v483_v31 }
  0x36   : > { %1156 = vmatpush3.msra.mxu0 %v483_v31  ;;  %1214 = vmatpush3.msra.mxu1 %v483_v31 }
  0x37   : > { %1157 = vmatprep.subr.mxu0 %v482_v32  ;;  %1199 = vmatprep.subr.mxu1 %v482_v32 }
  0x38   : > { %1158 = vmatpush3.msra.mxu0 %v482_v32  ;;  %1215 = vmatpush3.msra.mxu1 %v482_v32 }
  0x39   : > { %1159 = vmatprep.subr.mxu0 %v481_v33  ;;  %1200 = vmatprep.subr.mxu1 %v481_v33 }
  0x3a   : > { %1160 = vmatpush3.msra.mxu0 %v481_v33  ;;  %1216 = vmatpush3.msra.mxu1 %v481_v33 }
  0xd7   : > { %v1107_v35 = vpop.f32.mrf.mxu0 }
  0xd8   : > { %v392_v36 = vadd.f32 %v1107_v35, %v1013_v34 }
  0xd9   : > { %v386_v37 = vpop.f32.mrf.mxu0 }
  0xda   : > { %v387_v38 = vadd.f32 %v1013_v34, %v386_v37  ;;  %v466_v41 = vmax.f32 %v392_v36, 0.0 }
  0xdc   : > { %v1110_v39 = vpop.f32.mrf.mxu0  ;;  %v465_v40 = vmax.f32 %v387_v38, 0.0 }
  0xdd   : > { %v402_v42 = vadd.f32 %v1110_v39, %v1013_v34 }
  0xde   : > { %v396_v43 = vpop.f32.mrf.mxu0  ;;  %1161 = vmatprep.mubr.f32.mxu0 %v465_v40 }
  0xdf   : > { %v397_v44 = vadd.f32 %v1013_v34, %v396_v43  ;;  %1162 = vmatmul.mubr.f32.vlgmr.msra.gmra.mxu0 %v466_v41  ;;  %v468_v47 = vmax.f32 %v402_v42, 0.0 }
  0xe0   : > { %v1113_v45 = vpop.f32.mrf.mxu0 }
  0xe1   : > { %v467_v46 = vmax.f32 %v397_v44, 0.0  ;;  %v412_v48 = vadd.f32 %v1113_v45, %v1013_v34 }
  0xe2   : > { %v406_v49 = vpop.f32.mrf.mxu0 }
  0xe3   : > { %v407_v50 = vadd.f32 %v1013_v34, %v406_v49  ;;  %1164 = vmatprep.mubr.f32.mxu0 %v467_v46  ;;  %v470_v53 = vmax.f32 %v412_v48, 0.0 }
  0xe4   : > { %v1116_v51 = vpop.f32.mrf.mxu0  ;;  %1165 = vmatmul.mubr.f32.gmra.mxu0 %v468_v47 }
  0xe5   : > { %v469_v52 = vmax.f32 %v407_v50, 0.0  ;;  %v422_v54 = vadd.f32 %v1116_v51, %v1013_v34 }
  0xe6   : > { %v416_v55 = vpop.f32.mrf.mxu0 }
  0xe7   : > { %1167 = vmatprep.mubr.f32.mxu0 %v469_v52  ;;  %v417_v56 = vadd.f32 %v1013_v34, %v416_v55  ;;  %v472_v59 = vmax.f32 %v422_v54, 0.0 }
  0xe8   : > { %v1119_v57 = vpop.f32.mrf.mxu0  ;;  %1168 = vmatmul.mubr.f32.gmra.mxu0 %v470_v53 }
  0xe9   : > { %v471_v58 = vmax.f32 %v417_v56, 0.0  ;;  %v432_v60 = vadd.f32 %v1119_v57, %v1013_v34 }
  0xea   : > { %v426_v61 = vpop.f32.mrf.mxu0 }
  0xeb   : > { %v427_v62 = vadd.f32 %v1013_v34, %v426_v61  ;;  %1170 = vmatprep.mubr.f32.mxu1 %v471_v58  ;;  %v474_v1 = vmax.f32 %v432_v60, 0.0 }
  0xec   : > { %v1122_v63 = vpop.f32.mrf.mxu0  ;;  %1171 = vmatmul.mubr.f32.vlgmr.msra.gmra.mxu1 %v472_v59 }
  0xed   : > { %v473_v0 = vmax.f32 %v427_v62, 0.0  ;;  %v442_v2 = vadd.f32 %v1122_v63, %v1013_v34 }
  0xee   : > { %v436_v3 = vpop.f32.mrf.mxu0 }
  0xef   : > { %v437_v4 = vadd.f32 %v1013_v34, %v436_v3  ;;  %1173 = vmatprep.mubr.f32.mxu1 %v473_v0  ;;  %v476_v7 = vmax.f32 %v442_v2, 0.0 }
  0xf0   : > { %v1125_v5 = vpop.f32.mrf.mxu0  ;;  %1174 = vmatmul.mubr.f32.gmra.mxu1 %v474_v1 }
  0xf1   : > { %v475_v6 = vmax.f32 %v437_v4, 0.0  ;;  %v452_v8 = vadd.f32 %v1125_v5, %v1013_v34 }
  0xf2   : > { %v446_v9 = vpop.f32.mrf.mxu0 }
  0xf3   : > { %v447_v10 = vadd.f32 %v1013_v34, %v446_v9  ;;  %1176 = vmatprep.mubr.f32.mxu1 %v475_v6  ;;  %v478_v13 = vmax.f32 %v452_v8, 0.0 }
  0xf4   : > { %v1128_v11 = vpop.f32.mrf.mxu0  ;;  %1177 = vmatmul.mubr.f32.gmra.mxu1 %v476_v7 }
  0xf5   : > { %v477_v12 = vmax.f32 %v447_v10, 0.0  ;;  %v462_v14 = vadd.f32 %v1128_v11, %v1013_v34 }
  0xf6   : > { %v456_v15 = vpop.f32.mrf.mxu0 }
  0xf7   : > { %v457_v16 = vadd.f32 %v1013_v34, %v456_v15  ;;  %1179 = vmatprep.mubr.f32.mxu1 %v477_v12  ;;  %v480_v18 = vmax.f32 %v462_v14, 0.0 }
  0xf8   : > { %1180 = vmatmul.mubr.f32.gmra.mxu1 %v478_v13 }
  0xf9   : > { %v479_v17 = vmax.f32 %v457_v16, 0.0 }
  0xfb   : > { %1182 = vmatprep.mubr.f32.mxu1 %v479_v17 }
  0xfc   : > { %1183 = vmatmul.mubr.f32.gmra.mxu1 %v480_v18 }
 0x19f   : > { %v1163_v20 = vpop.f32.mrf.mxu0 }
 0x1a0   : > { %v576_v21 = vadd.f32 %v1163_v20, %v1586_v19 }
 0x1a1   : > { %v570_v22 = vpop.f32.mrf.mxu0 }
 0x1a2   : > { %v650_v23 = vmul.f32 0.5, %v576_v21  ;;  %v571_v24 = vadd.f32 %v1586_v19, %v570_v22 }
 0x1a4   : > { %v1166_v25 = vpop.f32.mrf.mxu0  ;;  %1305 = vtanh.f32 %v650_v23  ;;  %v649_v26 = vmul.f32 0.5, %v571_v24 }
 0x1a5   : > { %v586_v27 = vadd.f32 %v1166_v25, %v1586_v19 }
 0x1a6   : > { %v580_v28 = vpop.f32.mrf.mxu0  ;;  %1307 = vtanh.f32 %v649_v26 }
 0x1a7   : > { %v652_v29 = vmul.f32 0.5, %v586_v27  ;;  %v581_v30 = vadd.f32 %v1586_v19, %v580_v28 }
 0x1a8   : > { %v1169_v31 = vpop.f32.mrf.mxu0 }
 0x1a9   : > { %1309 = vtanh.f32 %v652_v29  ;;  %v651_v32 = vmul.f32 0.5, %v581_v30  ;;  %v596_v33 = vadd.f32 %v1169_v31, %v1586_v19 }
 0x1aa   : > { %v590_v34 = vpop.f32.mrf.mxu0 }
 0x1ab   : > { %1311 = vtanh.f32 %v651_v32  ;;  %v654_v35 = vmul.f32 0.5, %v596_v33  ;;  %v591_v36 = vadd.f32 %v1586_v19, %v590_v34 }
 0x1ac   : > { %v1172_v37 = vpop.f32.mrf.mxu1 }
 0x1ad   : > { %1313 = vtanh.f32 %v654_v35  ;;  %v653_v38 = vmul.f32 0.5, %v591_v36  ;;  %v606_v39 = vadd.f32 %v1172_v37, %v1586_v19 }
 0x1ae   : > { %v600_v40 = vpop.f32.mrf.mxu1 }
 0x1af   : > { %1315 = vtanh.f32 %v653_v38  ;;  %v656_v41 = vmul.f32 0.5, %v606_v39  ;;  %v601_v42 = vadd.f32 %v1586_v19, %v600_v40 }
 0x1b0   : > { %v1175_v43 = vpop.f32.mrf.mxu1 }
 0x1b1   : > { %1317 = vtanh.f32 %v656_v41  ;;  %v655_v44 = vmul.f32 0.5, %v601_v42  ;;  %v616_v45 = vadd.f32 %v1175_v43, %v1586_v19  ;;  %v1306_v46 = vpop.eup %1305 }
 0x1b2   : > { %v610_v47 = vpop.f32.mrf.mxu1  ;;  %v682_v48 = vadd.f32 1.0, %v1306_v46 }
 0x1b3   : > { %1319 = vtanh.f32 %v655_v44  ;;  %v658_v49 = vmul.f32 0.5, %v616_v45  ;;  %v611_v50 = vadd.f32 %v1586_v19, %v610_v47  ;;  %v1308_v51 = vpop.eup %1307 }
 0x1b4   : > { %v1178_v52 = vpop.f32.mrf.mxu1  ;;  %v698_v53 = vmul.f32 0.5, %v682_v48  ;;  %v681_v54 = vadd.f32 1.0, %v1308_v51 }
 0x1b5   : > { %1321 = vtanh.f32 %v658_v49  ;;  %v657_v55 = vmul.f32 0.5, %v611_v50  ;;  %v626_v57 = vadd.f32 %v1178_v52, %v1586_v19 }
 0x1b6   : > { %v1310_v56 = vpop.eup %1309  ;;  %v620_v58 = vpop.f32.mrf.mxu1  ;;  %715 = vst.msk [vmem:[%s1600_s18 + $0x8] sm:$0xff] %vm713_vm1, %v698_v53  ;;  %v697_v59 = vmul.f32 0.5, %v681_v54 }
 0x1b7   : > { %v684_v60 = vadd.f32 1.0, %v1310_v56  ;;  %1323 = vtanh.f32 %v657_v55  ;;  %v621_v61 = vadd.f32 %v1586_v19, %v620_v58  ;;  %v660_v63 = vmul.f32 0.5, %v626_v57 }
 0x1b8   : > { %v1312_v62 = vpop.eup %1311  ;;  %v1181_v0 = vpop.f32.mrf.mxu1  ;;  %714 = vst.msk [vmem:[%s1600_s18] sm:$0xff] %vm713_vm1, %v697_v59 }
 0x1b9   : > { %v700_v1 = vmul.f32 0.5, %v684_v60  ;;  %v683_v2 = vadd.f32 1.0, %v1312_v62  ;;  %v659_v3 = vmul.f32 0.5, %v621_v61  ;;  %v636_v4 = vadd.f32 %v1181_v0, %v1586_v19 }
 0x1ba   : > { %v1314_v5 = vpop.eup %1313  ;;  %1325 = vtanh.f32 %v660_v63  ;;  %v630_v6 = vpop.f32.mrf.mxu1 }
 0x1bb   : > { %717 = vst.msk [vmem:[%s1600_s18 + $0x18] sm:$0xff] %vm713_vm1, %v700_v1  ;;  %v699_v7 = vmul.f32 0.5, %v683_v2  ;;  %v686_v8 = vadd.f32 1.0, %v1314_v5  ;;  %1327 = vtanh.f32 %v659_v3  ;;  %v662_v9 = vmul.f32 0.5, %v636_v4 }
 0x1bc   : > { %v1316_v10 = vpop.eup %1315  ;;  %v631_v11 = vadd.f32 %v1586_v19, %v630_v6  ;;  %v1184_v12 = vpop.f32.mrf.mxu1 }
 0x1bd   : > { %716 = vst.msk [vmem:[%s1600_s18 + $0x10] sm:$0xff] %vm713_vm1, %v699_v7  ;;  %v702_v13 = vmul.f32 0.5, %v686_v8  ;;  %v685_v14 = vadd.f32 1.0, %v1316_v10  ;;  %1329 = vtanh.f32 %v662_v9  ;;  %v646_v15 = vadd.f32 %v1184_v12, %v1586_v19 }
 0x1be   : > { %v1318_v16 = vpop.eup %1317  ;;  %v661_v17 = vmul.f32 0.5, %v631_v11  ;;  %v640_v18 = vpop.f32.mrf.mxu1 }
 0x1bf   : > { %719 = vst.msk [vmem:[%s1600_s18 + $0x28] sm:$0xff] %vm713_vm1, %v702_v13  ;;  %v701_v20 = vmul.f32 0.5, %v685_v14  ;;  %v688_v21 = vadd.f32 1.0, %v1318_v16  ;;  %v664_v22 = vmul.f32 0.5, %v646_v15  ;;  %v641_v23 = vadd.f32 %v1586_v19, %v640_v18 }
 0x1c0   : > { %v1320_v24 = vpop.eup %1319  ;;  %1331 = vtanh.f32 %v661_v17 }
 0x1c1   : > { %718 = vst.msk [vmem:[%s1600_s18 + $0x20] sm:$0xff] %vm713_vm1, %v701_v20  ;;  %v704_v25 = vmul.f32 0.5, %v688_v21  ;;  %v687_v26 = vadd.f32 1.0, %v1320_v24  ;;  %1333 = vtanh.f32 %v664_v22  ;;  %v663_v27 = vmul.f32 0.5, %v641_v23 }
 0x1c2   : > { %v1322_v28 = vpop.eup %1321 }
 0x1c3   : > { %721 = vst.msk [vmem:[%s1600_s18 + $0x38] sm:$0xff] %vm713_vm1, %v704_v25  ;;  %v703_v29 = vmul.f32 0.5, %v687_v26  ;;  %v690_v30 = vadd.f32 1.0, %v1322_v28  ;;  %1335 = vtanh.f32 %v663_v27 }
 0x1c4   : > { %v1324_v31 = vpop.eup %1323 }
 0x1c5   : > { %720 = vst.msk [vmem:[%s1600_s18 + $0x30] sm:$0xff] %vm713_vm1, %v703_v29  ;;  %v706_v19 = vmul.f32 0.5, %v690_v30  ;;  %v689_v32 = vadd.f32 1.0, %v1324_v31 }
 0x1c7   : > { %v1326_v33 = vpop.eup %1325  ;;  %723 = vst.msk [vmem:[%s1600_s18 + $0x48] sm:$0xff] %vm713_vm1, %v706_v19  ;;  %v705_v34 = vmul.f32 0.5, %v689_v32 }
 0x1c8   : > { %v1328_v35 = vpop.eup %1327  ;;  %v692_v36 = vadd.f32 1.0, %v1326_v33 }
 0x1c9   : > { %722 = vst.msk [vmem:[%s1600_s18 + $0x40] sm:$0xff] %vm713_vm1, %v705_v34  ;;  %v691_v37 = vadd.f32 1.0, %v1328_v35 }
 0x1ca   : > { %v1330_v38 = vpop.eup %1329  ;;  %v708_v39 = vmul.f32 0.5, %v692_v36 }
 0x1cb   : > { %v707_v40 = vmul.f32 0.5, %v691_v37  ;;  %v694_v41 = vadd.f32 1.0, %v1330_v38 }
 0x1cc   : > { %725 = vst.msk [vmem:[%s1600_s18 + $0x58] sm:$0xff] %vm713_vm1, %v708_v39 }
 0x1cd   : > { %v1332_v42 = vpop.eup %1331  ;;  %724 = vst.msk [vmem:[%s1600_s18 + $0x50] sm:$0xff] %vm713_vm1, %v707_v40  ;;  %v710_v43 = vmul.f32 0.5, %v694_v41 }
 0x1ce   : > { %v1334_v44 = vpop.eup %1333  ;;  %v693_v45 = vadd.f32 1.0, %v1332_v42 }
 0x1cf   : > { %727 = vst.msk [vmem:[%s1600_s18 + $0x68] sm:$0xff] %vm713_vm1, %v710_v43  ;;  %v696_v46 = vadd.f32 1.0, %v1334_v44 }
 0x1d0   : > { %v1336_v47 = vpop.eup %1335  ;;  %v709_v48 = vmul.f32 0.5, %v693_v45 }
 0x1d1   : > { %v712_v49 = vmul.f32 0.5, %v696_v46  ;;  %v695_v50 = vadd.f32 1.0, %v1336_v47  ;;  %736 = sbr.rel (!%p1480_p4) target bundleno = 511 (0x1ff), region = 44 }
 0x1d2   : > { %726 = vst.msk [vmem:[%s1600_s18 + $0x60] sm:$0xff] %vm713_vm1, %v709_v48 }
 0x1d3   : > { %729 = vst.msk [vmem:[%s1600_s18 + $0x78] sm:$0xff] %vm713_vm1, %v712_v49  ;;  %v711_v51 = vmul.f32 0.5, %v695_v50 }
 0x1d5   : > { %728 = vst.msk [vmem:[%s1600_s18 + $0x70] sm:$0xff] %vm713_vm1, %v711_v51 }
 0x1d6   : > { %s1753_s14 = smov (!%p739_p8, %s738_s14), 16 }
 0x1d7   : > { %s1033_s24 = sshll.u32 %s1753_s14, 7 }
 0x1d8   : > { %p1036_p9 = scmp.eq.s32.totalorder %s1033_s24, 0 }
 0x1d9   : > { %s1652_s27 = sshrl.u32 (!%p1036_p9), %s1753_s14, 4 }
 0x1da   : > { %747 = sbr.rel (%p1036_p9) target bundleno = 511 (0x1ff), region = 48  ;;  %p1037_p10 = scmp.le.s32.totalorder (!%p1036_p9), %s1652_s27, 0 }
 0x1df   : > { %962 = sbr.rel (%p1037_p10) target bundleno = 494 (0x1ee), region = 124  ;;  %s1746_s21 = smov (!%p1037_p10), %s1646_s23 }
 0x1e0   : > { %s1747_s26 = smov (!%p1037_p10), %s1600_s18  ;;  %s1661_s6 = smov (!%p1037_p10), 0  }
 0x1e1   : > { %s1663_s28 = smov (!%p1037_p10), 0  }
 0x1e4 LB: >> { %v840_v52 = vld [vmem:[%s1399_s26] sm:$0xff]  ;;  %v842_v53 = vld [vmem:[%s1399_s26 + $0x8] sm:$0xff]  ;;  %v844_v54 = vld [vmem:[%s1399_s26 + $0x10] sm:$0xff]  ;;  %s872_s17 = sadd.s32 1, %s1403_s6  ;;  %s834_s28 = sadd.s32 1, %s1407_s28   ;;  %s1407_s28 = sphi %s1663_s28, %s834_s28   ;;  %s1403_s6 = sphi %s1661_s6, %s1748_s6   ;;  %s1399_s26 = sphi %s1747_s26, %s877_s26   ;;  %s1395_s21 = sphi %s1746_s21, %s878_s21  }
 0x1e5   : >> { %841 = vst [vmem:[%s1395_s21] sm:$0xff] %v840_v52  ;;  %843 = vst [vmem:[%s1395_s21 + $0x8] sm:$0xff] %v842_v53  ;;  %v846_v55 = vld [vmem:[%s1399_s26 + $0x18] sm:$0xff]  ;;  %v848_v56 = vld [vmem:[%s1399_s26 + $0x20] sm:$0xff]  ;;  %p873_p11 = scmp.ge.s32.totalorder %s872_s17, %s1652_s27  ;;  %p833_p12 = scmp.ge.s32.totalorder %s834_s28, %s1652_s27 }
 0x1e6   : >> { %845 = vst [vmem:[%s1395_s21 + $0x10] sm:$0xff] %v844_v54  ;;  %v850_v57 = vld [vmem:[%s1399_s26 + $0x28] sm:$0xff]  ;;  %847 = vst [vmem:[%s1395_s21 + $0x18] sm:$0xff] %v846_v55  ;;  %v852_v58 = vld [vmem:[%s1399_s26 + $0x30] sm:$0xff] }
 0x1e7   : >> { %849 = vst [vmem:[%s1395_s21 + $0x20] sm:$0xff] %v848_v56  ;;  %851 = vst [vmem:[%s1395_s21 + $0x28] sm:$0xff] %v850_v57  ;;  %v854_v59 = vld [vmem:[%s1399_s26 + $0x38] sm:$0xff]  ;;  %v856_v60 = vld [vmem:[%s1399_s26 + $0x40] sm:$0xff]  ;;  %s1755_s17 = smov (%p873_p11, %s872_s17), 0 }
 0x1e8   : >> { %853 = vst [vmem:[%s1395_s21 + $0x30] sm:$0xff] %v852_v58  ;;  %855 = vst [vmem:[%s1395_s21 + $0x38] sm:$0xff] %v854_v59  ;;  %v858_v61 = vld [vmem:[%s1399_s26 + $0x48] sm:$0xff]  ;;  %v860_v62 = vld [vmem:[%s1399_s26 + $0x50] sm:$0xff]  ;;  %s1038_s29 = sshll.u32 %s1755_s17, 7  ;;  %s1748_s6 = smov %s1755_s17 }
 0x1e9   : >> { %857 = vst [vmem:[%s1395_s21 + $0x40] sm:$0xff] %v856_v60  ;;  %v862_v63 = vld [vmem:[%s1399_s26 + $0x58] sm:$0xff]  ;;  %859 = vst [vmem:[%s1395_s21 + $0x48] sm:$0xff] %v858_v61  ;;  %v864_v0 = vld [vmem:[%s1399_s26 + $0x60] sm:$0xff]  ;;  %836 = sbr.rel (!%p833_p12) target bundleno = 484 (0x1e4), region = 130 }
 0x1ea   : >> { %861 = vst [vmem:[%s1395_s21 + $0x50] sm:$0xff] %v860_v62  ;;  %863 = vst [vmem:[%s1395_s21 + $0x58] sm:$0xff] %v862_v63  ;;  %v866_v1 = vld [vmem:[%s1399_s26 + $0x68] sm:$0xff]  ;;  %v868_v2 = vld [vmem:[%s1399_s26 + $0x70] sm:$0xff] }
 0x1eb   : >> { %865 = vst [vmem:[%s1395_s21 + $0x60] sm:$0xff] %v864_v0  ;;  %867 = vst [vmem:[%s1395_s21 + $0x68] sm:$0xff] %v866_v1  ;;  %v870_v3 = vld [vmem:[%s1399_s26 + $0x78] sm:$0xff]  ;;  %s877_s26 = scalar_lea.vmem %s1600_s18, %s1038_s29 [#allocation2]  }
 0x1ec   : >> { %869 = vst [vmem:[%s1395_s21 + $0x70] sm:$0xff] %v868_v2  ;;  %871 = vst [vmem:[%s1395_s21 + $0x78] sm:$0xff] %v870_v3  ;;  %s878_s21 = scalar_lea.vmem %s1646_s23, %s1038_s29  }
 0x1ee PF: > { %s1721_s30 = sand.u32 15, %s1753_s14   ;;  %s1049_s7 = sshll.u32 %s1652_s27, 7 }
 0x1ef   : > { %s883_s8 = scalar_lea.vmem %s1600_s18, %s1049_s7 [#allocation2]   ;;  %s885_s9 = scalar_lea.vmem %s1646_s23, %s1049_s7  }
 0x1f0   : > { %p1043_p13 = scmp.le.s32.totalorder %s1721_s30, 0 }
 0x1f1   : > { %s1409_s10 = smov (!%p1043_p13), %s885_s9   ;;  %s1413_s11 = smov (!%p1043_p13), %s883_s8  }
 0x1f2   : > { %976 = sbr.rel (%p1043_p13) target bundleno = 511 (0x1ff), region = 135  ;;  %s1417_s12 = smov (!%p1043_p13), 0  }
 0x1f3   : > { %s1421_s13 = smov (!%p1043_p13), 0  }
 0x1f7 LB: >> { %v895_v4 = vld [vmem:[%s1415_s11] sm:$0xff]  ;;  %s897_s14 = sadd.s32 1, %s1419_s12  ;;  %s889_s13 = sadd.s32 1, %s1423_s13   ;;  %s1423_s13 = sphi %s1421_s13, %s889_s13   ;;  %s1419_s12 = sphi %s1417_s12, %s1418_s12   ;;  %s1415_s11 = sphi %s1413_s11, %s902_s11   ;;  %s1411_s10 = sphi %s1409_s10, %s903_s10  }
 0x1f8   : >> { %896 = vst [vmem:[%s1411_s10] sm:$0xff] %v895_v4  ;;  %p898_p0 = scmp.ge.s32.totalorder %s897_s14, %s1721_s30  ;;  %p888_p1 = scmp.ge.s32.totalorder %s889_s13, %s1721_s30 }
 0x1fa   : >> { %s1757_s14 = smov (%p898_p0, %s897_s14), 0  ;;  %891 = sbr.rel (!%p888_p1) target bundleno = 503 (0x1f7), region = 141 }
 0x1fb   : >> { %s1044_s18 = sshll.u32 %s1757_s14, 3  ;;  %s1418_s12 = smov %s1757_s14  }
 0x1fc   : >> { %s902_s11 = scalar_lea.vmem %s883_s8, %s1044_s18 [#allocation2]   ;;  %s903_s10 = scalar_lea.vmem %s885_s9, %s1044_s18  }
 0x1ff PF: > { %p12_p2 = scmp.ge.s32.totalorder %s1470_s22, 6   ;;  %s1749_s18 = smov %s1387_s19 }
 0x200   : > { %s1750_s19 = smov %s1478_s25  ;;  %s1751_s20 = smov %s1470_s22 }
 0x201   :  { %14 = sbr.rel (!%p12_p2) target bundleno = 2 (0x2), region = 152 }

</bundles_post_ra>
